<compile_context>
chip_gen: v5e
topology: v5e:2x2
jax: 0.10.0
libtpu: 0.0.40
codegen_flags: <defaults>
</compile_context>

<pallas_src>
import functools

import jax
import jax.numpy as jnp
from jax.experimental import pallas as pl
from jax.experimental.pallas import tpu as pltpu

ALPHA = 1.0
GAMMA = 2.0

LANES = 128
MAX_BLOCK_ROWS = 2048  # 2048 * 128 * 4B = 1 MiB per f32 input block


def _focal_loss_kernel(pred_ref, targ_ref, out_ref, acc_ref, *,
                       alpha, gamma, n_total, valid_rows, block_rows, need_mask):
    i = pl.program_id(0)

    @pl.when(i == 0)
    def _():
        acc_ref[...] = jnp.zeros_like(acc_ref)

    diff = pred_ref[...].astype(jnp.float32) - targ_ref[...].astype(jnp.float32)
    se = diff * diff

    # Strength-reduce the power: |d|^g * d^2.
    if gamma == 2.0:
        focal = se * se                              # d^4, pure VPU
    elif gamma == float(int(gamma)) and gamma >= 0.0:
        w = jnp.ones_like(se)
        ad = jnp.abs(diff)
        for _ in range(int(gamma)):
            w = w * ad
        focal = w * se
    else:
        focal = (jnp.abs(diff) ** gamma) * se        # EUP pow only if needed

    if need_mask:
        # Last block may read past the end of the array (unspecified data);
        # mask rows >= valid_rows out of the reduction.
        row_ids = (jax.lax.broadcasted_iota(jnp.int32, focal.shape, 0)
                   + i * block_rows)
        focal = jnp.where(row_ids < valid_rows, focal, 0.0)

    # Per-step: VPU adds + one sublane reduce into a lane-wide accumulator.
    acc_ref[...] += jnp.sum(focal, axis=0, keepdims=True)

    @pl.when(i == pl.num_programs(0) - 1)
    def _():
        # Single cross-lane reduce + final scale (alpha folded into the mean).
        out_ref[...] = (jnp.sum(acc_ref[...], axis=1, keepdims=True)
                        * (alpha / n_total))


def focal_loss(pred, target, alpha=ALPHA, gamma=GAMMA):
    """Pallas TPU focal loss. pred/target: same shape. Returns scalar f32."""
    assert pred.shape == target.shape
    n_total = pred.size

    flat_p = pred.reshape(-1)
    flat_t = target.reshape(-1)
    if flat_p.dtype not in (jnp.float32, jnp.bfloat16):
        flat_p = flat_p.astype(jnp.float32)
        flat_t = flat_t.astype(jnp.float32)

    n = flat_p.size
    # Pad only to a lane multiple (zeros contribute 0 since pred == target
    # there). For typical NCHW shapes n % 128 == 0 and this is a free reshape.
    padded_n = pl.cdiv(n, LANES) * LANES
    if padded_n != n:
        flat_p = jnp.pad(flat_p, (0, padded_n - n))
        flat_t = jnp.pad(flat_t, (0, padded_n - n))
    rows = padded_n // LANES
    p2d = flat_p.reshape(rows, LANES)
    t2d = flat_t.reshape(rows, LANES)

    block_rows = min(MAX_BLOCK_ROWS, rows)
    grid = (pl.cdiv(rows, block_rows),)
    need_mask = (rows % block_rows) != 0

    kernel = functools.partial(
        _focal_loss_kernel,
        alpha=float(alpha),
        gamma=float(gamma),
        n_total=float(n_total),
        valid_rows=int(rows),
        block_rows=int(block_rows),
        need_mask=need_mask,
    )

    out = pl.pallas_call(
        kernel,
        out_shape=jax.ShapeDtypeStruct((1, 1), jnp.float32),
        grid_spec=pltpu.PrefetchScalarGridSpec(
            num_scalar_prefetch=0,
            grid=grid,
            in_specs=[
                pl.BlockSpec((block_rows, LANES), lambda i: (i, 0)),
                pl.BlockSpec((block_rows, LANES), lambda i: (i, 0)),
            ],
            out_specs=pl.BlockSpec((1, 1), lambda i: (0, 0)),
            scratch_shapes=[pltpu.VMEM((1, LANES), jnp.float32)],
        ),
        compiler_params=pltpu.CompilerParams(
            dimension_semantics=("arbitrary",),  # reduction over the grid axis
        ),
    )(p2d, t2d)

    return out[0, 0]
    # TODO(synk): on v7x, split the row range across the 2 TensorCores with a
    # leading "parallel" grid axis and combine two partial sums in the wrapper.


def focal_loss_ref(pred, target, alpha=ALPHA, gamma=GAMMA):
    diff = pred.astype(jnp.float32) - target.astype(jnp.float32)
    se = diff * diff
    weight = jnp.abs(diff) ** gamma
    return jnp.mean(alpha * weight * se)


if __name__ == "__main__":
    key = jax.random.PRNGKey(0)
    kp, kt = jax.random.split(key)
    # NCHW inputs, small shapes
    pred = jax.random.normal(kp, (2, 4, 16, 16), dtype=jnp.float32)
    target = jax.random.normal(kt, (2, 4, 16, 16), dtype=jnp.float32)

    out = jax.block_until_ready(focal_loss(pred, target))
    ref = jax.block_until_ready(focal_loss_ref(pred, target))

    assert jnp.allclose(out, ref, rtol=1e-5, atol=1e-5), (out, ref)
    print("KERNEL_OK")
</pallas_src>

<mosaic_0001>
module attributes {stable_mosaic.version = 11 : i64} {
  func.func @_focal_loss_kernel(%arg0: i32, %arg1: memref<16x128xf32, #tpu.memory_space<vmem>>, %arg2: memref<16x128xf32, #tpu.memory_space<vmem>>, %arg3: memref<1x1xf32, #tpu.memory_space<vmem>>, %arg4: memref<1x128xf32, #tpu.memory_space<vmem>>) attributes {dimension_semantics = [#tpu.dimension_semantics<arbitrary>], iteration_bounds = array<i64: 1>, scalar_prefetch = 0 : i64, scratch_operands = 1 : i64, tpu.core_type = #tpu.core_type<tc>, window_params = [{transform_indices = @transform_0, window_bounds = array<i64: 16, 128>}, {transform_indices = @transform_1, window_bounds = array<i64: 16, 128>}, {pipeline_mode = #tpu.pipeline_mode<synchronous>, transform_indices = @transform_2, window_bounds = array<i64: 1, 1>}]} {
    %c0_i32 = arith.constant 0 : i32
    %0 = arith.cmpi eq, %arg0, %c0_i32 : i32
    %1 = arith.extui %0 : i1 to i32
    %c0_i32_0 = arith.constant 0 : i32
    %2 = arith.cmpi ne, %1, %c0_i32_0 : i32
    scf.if %2 {
      %cst_10 = arith.constant 0.000000e+00 : f32
      %16 = vector.broadcast %cst_10 : f32 to vector<1x128xf32>
      %c0_11 = arith.constant 0 : index
      %c0_12 = arith.constant 0 : index
      %17 = vector.load %arg4[%c0_11, %c0_12] : memref<1x128xf32, #tpu.memory_space<vmem>>, vector<1x128xf32>
      tpu.vector_store %arg4[%c0_11, %c0_12], %16 {strides = array<i32>} : memref<1x128xf32, #tpu.memory_space<vmem>>, vector<1x128xf32>,
    } else {
    }
    %c0 = arith.constant 0 : index
    %c0_1 = arith.constant 0 : index
    %3 = vector.load %arg1[%c0, %c0_1] : memref<16x128xf32, #tpu.memory_space<vmem>>, vector<16x128xf32>
    %c0_2 = arith.constant 0 : index
    %c0_3 = arith.constant 0 : index
    %4 = vector.load %arg2[%c0_2, %c0_3] : memref<16x128xf32, #tpu.memory_space<vmem>>, vector<16x128xf32>
    %5 = arith.subf %3, %4 : vector<16x128xf32>
    %6 = arith.mulf %5, %5 : vector<16x128xf32>
    %7 = arith.mulf %6, %6 : vector<16x128xf32>
    %c0_4 = arith.constant 0 : index
    %c0_5 = arith.constant 0 : index
    %8 = vector.load %arg4[%c0_4, %c0_5] : memref<1x128xf32, #tpu.memory_space<vmem>>, vector<1x128xf32>
    %cst = arith.constant dense<0.000000e+00> : vector<128xf32>
    %9 = vector.multi_reduction <add>, %7, %cst [0] : vector<16x128xf32> to vector<128xf32>
    %10 = vector.shape_cast %9 : vector<128xf32> to vector<1x128xf32>
    %11 = arith.addf %8, %10 : vector<1x128xf32>
    %c0_6 = arith.constant 0 : index
    %c0_7 = arith.constant 0 : index
    %12 = vector.load %arg4[%c0_6, %c0_7] : memref<1x128xf32, #tpu.memory_space<vmem>>, vector<1x128xf32>
    tpu.vector_store %arg4[%c0_6, %c0_7], %11 {strides = array<i32>} : memref<1x128xf32, #tpu.memory_space<vmem>>, vector<1x128xf32>,
    %c0_i32_8 = arith.constant 0 : i32
    %13 = arith.cmpi eq, %arg0, %c0_i32_8 : i32
    %14 = arith.extui %13 : i1 to i32
    %c0_i32_9 = arith.constant 0 : i32
    %15 = arith.cmpi ne, %14, %c0_i32_9 : i32
    scf.if %15 {
      %c0_10 = arith.constant 0 : index
      %c0_11 = arith.constant 0 : index
      %16 = vector.load %arg4[%c0_10, %c0_11] : memref<1x128xf32, #tpu.memory_space<vmem>>, vector<1x128xf32>
      %cst_12 = arith.constant dense<0.000000e+00> : vector<1xf32>
      %17 = vector.multi_reduction <add>, %16, %cst_12 [1] : vector<1x128xf32> to vector<1xf32>
      %18 = vector.shape_cast %17 : vector<1xf32> to vector<1x1xf32>
      %cst_13 = arith.constant 4.8828125E-4 : f32
      %19 = vector.broadcast %cst_13 : f32 to vector<1x1xf32>
      %20 = arith.mulf %18, %19 : vector<1x1xf32>
      %c0_14 = arith.constant 0 : index
      %c0_15 = arith.constant 0 : index
      %21 = vector.load %arg3[%c0_14, %c0_15] : memref<1x1xf32, #tpu.memory_space<vmem>>, vector<1x1xf32>
      tpu.vector_store %arg3[%c0_14, %c0_15], %20 {strides = array<i32>} : memref<1x1xf32, #tpu.memory_space<vmem>>, vector<1x1xf32>,
    } else {
    }
    return
  }
  func.func @transform_0(%arg0: i32) -> (i32, i32) {
    %c0_i32 = arith.constant 0 : i32
    %c0_i32_0 = arith.constant 0 : i32
    return %arg0, %c0_i32 : i32, i32
  }
  func.func @transform_1(%arg0: i32) -> (i32, i32) {
    %c0_i32 = arith.constant 0 : i32
    %c0_i32_0 = arith.constant 0 : i32
    return %arg0, %c0_i32 : i32, i32
  }
  func.func @transform_2(%arg0: i32) -> (i32, i32) {
    %c0_i32 = arith.constant 0 : i32
    %c0_i32_0 = arith.constant 0 : i32
    %c0_i32_1 = arith.constant 0 : i32
    return %c0_i32, %c0_i32_0 : i32, i32
  }
}

</mosaic_0001>

<bundles_post_ra>
// kernel: tpu_custom_call.1
= control target key start
LH: loop header
LB: loop body
LE: loop exit
PB: predicated region body
PF: predicated region fallthrough
CT: control target
= control target key end

     0   :  { %7 = vsyncpa [#allocation4], 0  ;;  %s212_s0 = inlined_call_operand.hbm [shape: f32[16,128], index: 0, kind: input, shape index: {}]   ;;  %s213_s1 = inlined_call_operand.hbm [shape: f32[16,128], index: 1, kind: input, shape index: {}]   ;;  %s214_s2 = inlined_call_operand.hbm [shape: f32[1,1], index: 2, kind: output, shape index: {}]  }
   0x1   :  { %8 = vsyncpa [#allocation7], 0 }
   0x2   :  { %9 = vsyncpa [#allocation5], 0  ;;  %s14_s11 = sshll.u32 %s212_s0, 4  ;;  %s182_s12 = smov [#allocation3]   ;;  %s15_s11 = int_to_ptr.hbm [resolvable:$true] %s14_s11 }
   0x3   :  { %s16_s13 = sshll.u32 %s182_s12, 4  ;;  %s27_s16 = sshll.u32 %s213_s1, 4  ;;  %s17_s13 = int_to_ptr.vmem [resolvable:$true] %s16_s13  ;;  %s28_s16 = int_to_ptr.hbm [resolvable:$true] %s27_s16 }
   0x4   :  { %s183_s17 = smov 128   ;;  %s184_s18 = smov 8  }
   0x5   :  { %22 = dma.hbm_to_vmem [thread:$0]  %s15_s11, 256, %s17_s13, [#allocation4], %s183_s17, %s183_s17, %s184_s18  }
   0x6   :  { %s185_s19 = smov [#allocation6]  }
   0x7   :  { %s29_s20 = sshll.u32 %s185_s19, 4  ;;  %s30_s20 = int_to_ptr.vmem [resolvable:$true] %s29_s20 }
   0x8   :  { %35 = dma.hbm_to_vmem [thread:$0]  %s28_s16, 256, %s30_s20, [#allocation7], %s183_s17, %s183_s17, %s184_s18  }
   0x9   :  { %176 = dma.done.wait [#allocation4], 256  }
   0xa   :  { %177 = vsyncadd [#allocation4], 4294967040 }
   0xb   :  { %178 = dma.done.wait [#allocation7], 256  }
   0xc   :  { %179 = vsyncadd [#allocation7], 4294967040  ;;  %v186_v0 = vmov 0.0   ;;  %v49_v1 = vld [vmem:[#allocation3] sm:$0xff]  ;;  %v50_v2 = vld [vmem:[#allocation3 + $0x8] sm:$0xff]  ;;  %vm73_vm0 = vcmask 1040384  }
   0xd   :  { %48 = vst [vmem:[#allocation2] sm:$0x1] %v186_v0  ;;  %v51_v3 = vld [vmem:[#allocation6] sm:$0xff]  ;;  %v52_v4 = vld [vmem:[#allocation6 + $0x8] sm:$0xff]  ;;  %s187_s0 = smov [#allocation8]   ;;  %s87_s23 = sshll.u32 %s214_s2, 4  ;;  %s88_s23 = int_to_ptr.hbm [resolvable:$true] %s87_s23 }
   0xe   :  { %v53_v5 = vsub.f32 %v49_v1, %v51_v3  ;;  %v54_v6 = vsub.f32 %v50_v2, %v52_v4  ;;  %s85_s1 = sshll.u32 %s187_s0, 4  ;;  %vm78_vm1 = vcmask 0   ;;  %s86_s1 = int_to_ptr.vmem [resolvable:$true] %s85_s1 }
  0x10   :  { %v55_v7 = vmul.f32 %v53_v5, %v53_v5  ;;  %v56_v8 = vmul.f32 %v54_v6, %v54_v6 }
  0x12   :  { %v57_v9 = vmul.f32 %v55_v7, %v55_v7  ;;  %v58_v10 = vmul.f32 %v56_v8, %v56_v8 }
  0x14   :  { %v60_v11 = vadd.f32 %v58_v10, %v57_v9  ;;  %v59_v17 = vld [vmem:[#allocation2] sm:$0x1] }
  0x16   :  { %v61_v12 = vrot.slane %v60_v11, 4 }
  0x18   :  { %v62_v13 = vadd.f32 %v61_v12, %v60_v11 }
  0x1a   :  { %v63_v14 = vrot.slane %v62_v13, 2 }
  0x1c   :  { %v64_v15 = vadd.f32 %v63_v14, %v62_v13 }
  0x1e   :  { %v65_v16 = vrot.slane %v64_v15, 1 }
  0x20   :  { %v66_v18 = vadd.f32 %v65_v16, %v64_v15 }
  0x22   :  { %v67_v19 = vadd.f32 %v66_v18, %v59_v17 }
  0x24   :  { %68 = vst [vmem:[#allocation2] sm:$0x1] %v67_v19 }
  0x2b   :  { %v72_v20 = vld [vmem:[#allocation2] sm:$0x1] }
  0x2c   :  { %v74_v21 = vsel %vm73_vm0, %v72_v20, 0.0 }
  0x2d   :  { %75 = vadd.xlane.f32.xlu0 %v74_v21 }
  0xa0   :  { %v76_v22 = vpop.xlane.xlu0 %75 }
  0xa1   :  { %v77_v23 = vmul.f32 0.00048828125, %v76_v22 }
  0xa3   :  { %79 = vst.msk [vmem:[#allocation8] sm:$0x1] %vm78_vm1, %v77_v23 }
  0xa4   :  { %90 = dma.vmem_to_hbm [thread:$0]  %s86_s1, 16, %s88_s23, [#allocation5]  }
  0xa5   :  { %180 = dma.done.wait [#allocation5], 16  }
  0xa6   :  { %181 = vsyncadd [#allocation5], 4294967280 }
  0xa7   :  { %95 = vsyncpa [#allocation4], 1 }
  0xa8   :  { %96 = vsyncpa [#allocation7], 1 }
  0xa9   :  { %97 = vsyncpa [#allocation5], 1 }

</bundles_post_ra>
